<compile_context>
chip_gen: v5e
topology: v5e:2x2
jax: 0.10.0
libtpu: 0.0.40
codegen_flags: <defaults>
</compile_context>

<pallas_src>
import functools

import jax
import jax.numpy as jnp
from jax import lax
from jax.experimental import pallas as pl
from jax.experimental.pallas import tpu as pltpu


def attention_kernel(x_ref, wf_ref, bf_ref, ww_ref, bo_ref, o_ref, *,
                     coutp, seq_len, block_b):
    # x_ref / o_ref : (Cin, block_b * L) fp32, channels-first, lane-dense.
    # wf_ref        : (3*coutp, Cin) bf16, stacked [Wg; Wtheta; Wphi], zero-padded rows.
    # bf_ref        : (3*coutp, 1)  fp32 stacked biases (zero-padded).
    # ww_ref        : (Cin, coutp)  bf16, BN scale folded in, zero-padded cols.
    # bo_ref        : (Cin, 1)      fp32 folded bias (scale*bw + shift).
    inv_l = 1.0 / seq_len

    x = x_ref[...]                                   # (Cin, N) fp32
    xc = x.astype(jnp.bfloat16)
    wf = wf_ref[...]                                 # bf16
    ww = ww_ref[...]                                 # bf16

    # One fused projection matmul for all block_b batches:
    # (3*coutp, Cin) @ (Cin, N) -> (3*coutp, N), fp32 accumulation.
    proj = lax.dot_general(wf, xc, (((1,), (0,)), ((), ())),
                           preferred_element_type=jnp.float32) + bf_ref[...]

    # coutp is a multiple of 8 -> these row slices are sublane-tile aligned.
    g = proj[0:coutp].astype(jnp.bfloat16)           # (coutp, N)
    theta = proj[coutp:2 * coutp].astype(jnp.bfloat16)
    phi = proj[2 * coutp:3 * coutp].astype(jnp.bfloat16)

    # Tiny per-batch matmuls only (no (L, L) intermediate; W-conv fused in).
    # TODO(synk): for very small Cout a VPU/XLU lane-reduction for S could be
    # used instead of the MXU; kept on the MXU here for lowering robustness.
    pieces = []
    for b in range(block_b):                         # static, tiny unrolled body
        lo = b * seq_len
        g_b = g[:, lo:lo + seq_len]
        th_b = theta[:, lo:lo + seq_len]
        ph_b = phi[:, lo:lo + seq_len]
        # S_b = (phi_b @ g_b^T) / L                   : (coutp, coutp)
        s = lax.dot_general(ph_b, g_b, (((1,), (1,)), ((), ())),
                            preferred_element_type=jnp.float32) * inv_l
        # m_b = ww_folded @ S_b^T                     : (Cin, coutp)
        m = lax.dot_general(ww, s.astype(jnp.bfloat16), (((1,), (1,)), ((), ())),
                            preferred_element_type=jnp.float32)
        # wy_b = m_b @ theta_b                        : (Cin, L)
        wy = lax.dot_general(m.astype(jnp.bfloat16), th_b, (((1,), (0,)), ((), ())),
                             preferred_element_type=jnp.float32)
        pieces.append(wy)

    wy_full = pieces[0] if block_b == 1 else jnp.concatenate(pieces, axis=1)
    # Folded conv-bias/BN shift + residual; one lane-dense store per grid step.
    o_ref[...] = (wy_full + bo_ref[...] + x).astype(o_ref.dtype)


def _choose_block_b(B, Cin, L, coutp, budget_bytes=24 << 20):
    """Largest batch block fitting a VMEM budget (double-buffered x/out + proj)."""
    per_b = 4 * Cin * L * 4 + 3 * coutp * L * 4
    cap = max(1, int(budget_bytes) // max(per_b, 1))
    if cap >= B:
        return B                                   # single grid step: no split overhead
    aligned = [bb for bb in range(1, min(cap, B) + 1)
               if B % bb == 0 and (bb * L) % 128 == 0]
    if aligned:
        even = [bb for bb in aligned if (B // bb) % 2 == 0]   # balance 2 TCs
        return max(even) if even else max(aligned)
    divs = [bb for bb in range(1, min(cap, B) + 1) if B % bb == 0]
    return max(divs) if divs else 1


def attention_forward(x_ncl, params, *, block_b=None):
    """x_ncl: (B, C_in, L) float32 (PyTorch Conv1d layout). Returns (B, C_in, L)."""
    B, Cin, L = x_ncl.shape
    Cout = params["wg"].shape[0]
    Coutp = ((Cout + 7) // 8) * 8                  # sublane-aligned channel padding

    # Fold BatchNorm1d (eval stats) into the W-conv weights/bias.
    eps = 1e-5
    scale = params["bn_gamma"] / jnp.sqrt(params["bn_var"] + eps)
    shift = params["bn_beta"] - params["bn_mean"] * scale

    def pad_rows(w):
        return jnp.pad(w, ((0, Coutp - Cout), (0, 0)))

    def pad_vec(v):
        return jnp.pad(v, (0, Coutp - Cout))

    # Stacked, zero-padded projection weights/biases; weights pre-cast to bf16.
    wf = jnp.concatenate([pad_rows(params["wg"]), pad_rows(params["wt"]),
                          pad_rows(params["wp"])], axis=0).astype(jnp.bfloat16)
    bf = jnp.concatenate([pad_vec(params["bg"]), pad_vec(params["bt"]),
                          pad_vec(params["bp"])]).reshape(3 * Coutp, 1)

    ww_f = jnp.pad(scale[:, None] * params["ww"],
                   ((0, 0), (0, Coutp - Cout))).astype(jnp.bfloat16)
    bo = (scale * params["bw"] + shift).reshape(Cin, 1).astype(jnp.float32)

    # Channels-first lane-dense slab: (Cin, B*L).  Layout plumbing only.
    x_flat = jnp.transpose(x_ncl, (1, 0, 2)).reshape(Cin, B * L)

    if block_b is None:
        block_b = _choose_block_b(B, Cin, L, Coutp)
    assert B % block_b == 0, "block_b must divide the batch size"
    nb = B // block_b
    N = block_b * L

    vmem_need = (4 * Cin * N * 4 + 3 * Coutp * N * 4
                 + int(wf.size) * 2 + int(ww_f.size) * 2
                 + 4 * (int(bf.size) + int(bo.size)) + (2 << 20))
    vmem_limit = int(min(max(vmem_need, 8 << 20), 28 << 20))   # safe on v5e/v6e/v7x

    flops = (2 * (3 * Coutp) * Cin * B * L            # fused projection
             + B * (2 * Coutp * Coutp * L             # S
                    + 2 * Cin * Coutp * Coutp         # m = ww @ S^T
                    + 2 * Cin * Coutp * L)            # apply
             + 2 * B * Cin * L)                       # bias + residual
    bytes_accessed = (2 * B * Cin * L * 4
                      + int(wf.size) * 2 + int(ww_f.size) * 2
                      + 4 * (int(bf.size) + int(bo.size)))

    kernel = functools.partial(attention_kernel, coutp=Coutp, seq_len=L,
                               block_b=block_b)

    def full2d(shape):
        return pl.BlockSpec(shape, lambda i: (0, 0))

    out_flat = pl.pallas_call(
        kernel,
        out_shape=jax.ShapeDtypeStruct((Cin, B * L), x_ncl.dtype),
        grid=(nb,),
        in_specs=[
            pl.BlockSpec((Cin, N), lambda i: (0, i)),     # x slab
            full2d((3 * Coutp, Cin)),                     # fused proj weights (bf16)
            full2d((3 * Coutp, 1)),                       # fused proj biases
            full2d((Cin, Coutp)),                         # folded W-conv weights (bf16)
            full2d((Cin, 1)),                             # folded W-conv bias + BN shift
        ],
        out_specs=pl.BlockSpec((Cin, N), lambda i: (0, i)),
        compiler_params=pltpu.CompilerParams(
            dimension_semantics=("parallel",),
            vmem_limit_bytes=vmem_limit),
        cost_estimate=pl.CostEstimate(flops=flops, transcendentals=0,
                                      bytes_accessed=bytes_accessed),
    )(x_flat, wf, bf, ww_f, bo)

    return out_flat.reshape(Cin, B, L).transpose(1, 0, 2)


def reference_forward(x_ncl, params):
    """Pure-JAX mirror of the PyTorch forward (fp32 HIGHEST precision)."""
    B, Cin, L = x_ncl.shape
    eps = 1e-5
    hp = jax.lax.Precision.HIGHEST

    def conv1x1(x, w, b):            # x: (B, C_in, L), w: (C_out, C_in)
        return jnp.einsum("oc,bcl->bol", w, x, precision=hp) + b[None, :, None]

    g_x = conv1x1(x_ncl, params["wg"], params["bg"]).transpose(0, 2, 1)      # (B, L, Cout)
    theta_x = conv1x1(x_ncl, params["wt"], params["bt"]).transpose(0, 2, 1)  # (B, L, Cout)
    phi_x = conv1x1(x_ncl, params["wp"], params["bp"])                        # (B, Cout, L)
    f = jnp.einsum("blc,bcm->blm", theta_x, phi_x, precision=hp) / L          # (B, L, L)
    y = jnp.einsum("blm,bmc->blc", f, g_x, precision=hp).transpose(0, 2, 1)   # (B, Cout, L)
    w_y = conv1x1(y, params["ww"], params["bw"])                              # (B, Cin, L)
    scale = params["bn_gamma"] / jnp.sqrt(params["bn_var"] + eps)
    shift = params["bn_beta"] - params["bn_mean"] * scale
    w_y = w_y * scale[None, :, None] + shift[None, :, None]
    return w_y + x_ncl


def init_params(key, in_channels, out_channels):
    ks = jax.random.split(key, 8)
    k_in = 1.0 / jnp.sqrt(in_channels)
    k_out = 1.0 / jnp.sqrt(out_channels)
    u = lambda k, shape, bound: jax.random.uniform(k, shape, jnp.float32, -bound, bound)
    return {
        # Conv1d weights stored with the kernel dim (=1) squeezed: (C_out, C_in)
        "wg": u(ks[0], (out_channels, in_channels), k_in),
        "bg": u(ks[1], (out_channels,), k_in),
        "wt": u(ks[2], (out_channels, in_channels), k_in),
        "bt": u(ks[3], (out_channels,), k_in),
        "wp": u(ks[4], (out_channels, in_channels), k_in),
        "bp": u(ks[5], (out_channels,), k_in),
        "ww": u(ks[6], (in_channels, out_channels), k_out),
        "bw": u(ks[7], (in_channels,), k_out),
        # BatchNorm1d(in_channels): nn.init.constant(weight, 0), constant(bias, 0)
        "bn_gamma": jnp.zeros((in_channels,), jnp.float32),
        "bn_beta": jnp.zeros((in_channels,), jnp.float32),
        "bn_mean": jnp.zeros((in_channels,), jnp.float32),
        "bn_var": jnp.ones((in_channels,), jnp.float32),
    }


if __name__ == "__main__":
    B, C_IN, L = 2, 4, 16
    C_OUT = 2                                  # Attention(in_channels=4, out_channels=2)

    key = jax.random.PRNGKey(0)
    kx, kp, kbn = jax.random.split(key, 3)
    x = jax.random.normal(kx, (B, C_IN, L), jnp.float32)
    params = init_params(kp, C_IN, C_OUT)

    # Test 1: module-faithful init (BN gamma=beta=0 -> output == x exactly).
    out = jax.block_until_ready(attention_forward(x, params))
    ref = reference_forward(x, params)
    assert out.shape == (B, C_IN, L)
    assert jnp.allclose(out, ref, atol=1e-6, rtol=1e-6), "mismatch vs reference (zero BN)"

    # Test 2: nonzero BN affine to exercise the full compute path.
    # bf16 MXU operands + reassociated matmul chain -> loose fp tolerance.
    k1, k2, k3, k4 = jax.random.split(kbn, 4)
    params2 = dict(params)
    params2["bn_gamma"] = jax.random.uniform(k1, (C_IN,), jnp.float32, 0.5, 1.5)
    params2["bn_beta"] = jax.random.normal(k2, (C_IN,), jnp.float32) * 0.1
    params2["bn_mean"] = jax.random.normal(k3, (C_IN,), jnp.float32) * 0.1
    params2["bn_var"] = jax.random.uniform(k4, (C_IN,), jnp.float32, 0.5, 1.5)
    out2 = jax.block_until_ready(attention_forward(x, params2))
    ref2 = reference_forward(x, params2)
    assert jnp.allclose(out2, ref2, atol=5e-2, rtol=5e-2), (
        "mismatch vs reference (nonzero BN), max abs diff = "
        f"{float(jnp.max(jnp.abs(out2 - ref2)))}")

    print("KERNEL_OK")
</pallas_src>

<mosaic_0001>
module attributes {stable_mosaic.version = 11 : i64} {
  func.func @attention_kernel(%arg0: i32, %arg1: memref<4x32xf32, #tpu.memory_space<vmem>>, %arg2: memref<24x4xbf16, #tpu.memory_space<vmem>>, %arg3: memref<24x1xf32, #tpu.memory_space<vmem>>, %arg4: memref<4x8xbf16, #tpu.memory_space<vmem>>, %arg5: memref<4x1xf32, #tpu.memory_space<vmem>>, %arg6: memref<4x32xf32, #tpu.memory_space<vmem>>) attributes {dimension_semantics = [#tpu.dimension_semantics<parallel>], iteration_bounds = array<i64: 1>, scalar_prefetch = 0 : i64, scratch_operands = 0 : i64, tpu.core_type = #tpu.core_type<tc>, window_params = [{transform_indices = @transform_0, window_bounds = array<i64: 4, 32>}, {pipeline_mode = #tpu.pipeline_mode<synchronous>, transform_indices = @transform_1, window_bounds = array<i64: 24, 4>}, {pipeline_mode = #tpu.pipeline_mode<synchronous>, transform_indices = @transform_2, window_bounds = array<i64: 24, 1>}, {pipeline_mode = #tpu.pipeline_mode<synchronous>, transform_indices = @transform_3, window_bounds = array<i64: 4, 8>}, {pipeline_mode = #tpu.pipeline_mode<synchronous>, transform_indices = @transform_4, window_bounds = array<i64: 4, 1>}, {transform_indices = @transform_5, window_bounds = array<i64: 4, 32>}]} {
    %c0 = arith.constant 0 : index
    %c0_0 = arith.constant 0 : index
    %0 = vector.load %arg1[%c0, %c0_0] : memref<4x32xf32, #tpu.memory_space<vmem>>, vector<4x32xf32>
    %1 = arith.truncf %0 : vector<4x32xf32> to vector<4x32xbf16>
    %c0_1 = arith.constant 0 : index
    %c0_2 = arith.constant 0 : index
    %2 = vector.load %arg2[%c0_1, %c0_2] : memref<24x4xbf16, #tpu.memory_space<vmem>>, vector<24x4xbf16>
    %c0_3 = arith.constant 0 : index
    %c0_4 = arith.constant 0 : index
    %3 = vector.load %arg4[%c0_3, %c0_4] : memref<4x8xbf16, #tpu.memory_space<vmem>>, vector<4x8xbf16>
    %cst = arith.constant dense<0.000000e+00> : vector<24x32xf32>
    %4 = tpu.matmul %2, %1, %cst {dimension_numbers = #tpu.dot_dimension_numbers<[1], [0], [0], [1], [0, 0, 1, 1], [], []>} : vector<24x4xbf16>, vector<4x32xbf16>, vector<24x32xf32> -> vector<24x32xf32>
    %c0_5 = arith.constant 0 : index
    %c0_6 = arith.constant 0 : index
    %5 = vector.load %arg3[%c0_5, %c0_6] : memref<24x1xf32, #tpu.memory_space<vmem>>, vector<24x1xf32>
    %6 = vector.broadcast %5 : vector<24x1xf32> to vector<24x32xf32>
    %7 = arith.addf %4, %6 : vector<24x32xf32>
    %8 = vector.extract_strided_slice %7 {offsets = [0, 0], sizes = [8, 32], strides = [1, 1]} : vector<24x32xf32> to vector<8x32xf32>
    %9 = arith.truncf %8 : vector<8x32xf32> to vector<8x32xbf16>
    %10 = vector.extract_strided_slice %7 {offsets = [8, 0], sizes = [8, 32], strides = [1, 1]} : vector<24x32xf32> to vector<8x32xf32>
    %11 = arith.truncf %10 : vector<8x32xf32> to vector<8x32xbf16>
    %12 = vector.extract_strided_slice %7 {offsets = [16, 0], sizes = [8, 32], strides = [1, 1]} : vector<24x32xf32> to vector<8x32xf32>
    %13 = arith.truncf %12 : vector<8x32xf32> to vector<8x32xbf16>
    %14 = vector.extract_strided_slice %9 {offsets = [0, 0], sizes = [8, 16], strides = [1, 1]} : vector<8x32xbf16> to vector<8x16xbf16>
    %15 = vector.extract_strided_slice %11 {offsets = [0, 0], sizes = [8, 16], strides = [1, 1]} : vector<8x32xbf16> to vector<8x16xbf16>
    %16 = vector.extract_strided_slice %13 {offsets = [0, 0], sizes = [8, 16], strides = [1, 1]} : vector<8x32xbf16> to vector<8x16xbf16>
    %cst_7 = arith.constant dense<0.000000e+00> : vector<8x8xf32>
    %17 = tpu.matmul %16, %14, %cst_7 {dimension_numbers = #tpu.dot_dimension_numbers<[1], [1], [0], [0], [0, 0, 1, 0], [], []>} : vector<8x16xbf16>, vector<8x16xbf16>, vector<8x8xf32> -> vector<8x8xf32>
    %cst_8 = arith.constant 6.250000e-02 : f32
    %18 = vector.broadcast %cst_8 : f32 to vector<8x8xf32>
    %19 = arith.mulf %17, %18 : vector<8x8xf32>
    %20 = arith.truncf %19 : vector<8x8xf32> to vector<8x8xbf16>
    %cst_9 = arith.constant dense<0.000000e+00> : vector<4x8xf32>
    %21 = tpu.matmul %3, %20, %cst_9 {dimension_numbers = #tpu.dot_dimension_numbers<[1], [1], [0], [0], [0, 0, 1, 0], [], []>} : vector<4x8xbf16>, vector<8x8xbf16>, vector<4x8xf32> -> vector<4x8xf32>
    %22 = arith.truncf %21 : vector<4x8xf32> to vector<4x8xbf16>
    %cst_10 = arith.constant dense<0.000000e+00> : vector<4x16xf32>
    %23 = tpu.matmul %22, %15, %cst_10 {dimension_numbers = #tpu.dot_dimension_numbers<[1], [0], [0], [1], [0, 0, 1, 1], [], []>} : vector<4x8xbf16>, vector<8x16xbf16>, vector<4x16xf32> -> vector<4x16xf32>
    %24 = vector.extract_strided_slice %9 {offsets = [0, 16], sizes = [8, 16], strides = [1, 1]} : vector<8x32xbf16> to vector<8x16xbf16>
    %25 = vector.extract_strided_slice %11 {offsets = [0, 16], sizes = [8, 16], strides = [1, 1]} : vector<8x32xbf16> to vector<8x16xbf16>
    %26 = vector.extract_strided_slice %13 {offsets = [0, 16], sizes = [8, 16], strides = [1, 1]} : vector<8x32xbf16> to vector<8x16xbf16>
    %cst_11 = arith.constant dense<0.000000e+00> : vector<8x8xf32>
    %27 = tpu.matmul %26, %24, %cst_11 {dimension_numbers = #tpu.dot_dimension_numbers<[1], [1], [0], [0], [0, 0, 1, 0], [], []>} : vector<8x16xbf16>, vector<8x16xbf16>, vector<8x8xf32> -> vector<8x8xf32>
    %cst_12 = arith.constant 6.250000e-02 : f32
    %28 = vector.broadcast %cst_12 : f32 to vector<8x8xf32>
    %29 = arith.mulf %27, %28 : vector<8x8xf32>
    %30 = arith.truncf %29 : vector<8x8xf32> to vector<8x8xbf16>
    %cst_13 = arith.constant dense<0.000000e+00> : vector<4x8xf32>
    %31 = tpu.matmul %3, %30, %cst_13 {dimension_numbers = #tpu.dot_dimension_numbers<[1], [1], [0], [0], [0, 0, 1, 0], [], []>} : vector<4x8xbf16>, vector<8x8xbf16>, vector<4x8xf32> -> vector<4x8xf32>
    %32 = arith.truncf %31 : vector<4x8xf32> to vector<4x8xbf16>
    %cst_14 = arith.constant dense<0.000000e+00> : vector<4x16xf32>
    %33 = tpu.matmul %32, %25, %cst_14 {dimension_numbers = #tpu.dot_dimension_numbers<[1], [0], [0], [1], [0, 0, 1, 1], [], []>} : vector<4x8xbf16>, vector<8x16xbf16>, vector<4x16xf32> -> vector<4x16xf32>
    %34 = tpu.concatenate %23, %33 in 1 : vector<4x16xf32>, vector<4x16xf32> -> vector<4x32xf32>
    %c0_15 = arith.constant 0 : index
    %c0_16 = arith.constant 0 : index
    %35 = vector.load %arg5[%c0_15, %c0_16] : memref<4x1xf32, #tpu.memory_space<vmem>>, vector<4x1xf32>
    %36 = vector.broadcast %35 : vector<4x1xf32> to vector<4x32xf32>
    %37 = arith.addf %34, %36 : vector<4x32xf32>
    %38 = arith.addf %37, %0 : vector<4x32xf32>
    %c0_17 = arith.constant 0 : index
    %c0_18 = arith.constant 0 : index
    %39 = vector.load %arg6[%c0_17, %c0_18] : memref<4x32xf32, #tpu.memory_space<vmem>>, vector<4x32xf32>
    tpu.vector_store %arg6[%c0_17, %c0_18], %38 {strides = array<i32>} : memref<4x32xf32, #tpu.memory_space<vmem>>, vector<4x32xf32>,
    return
  }
  func.func @transform_0(%arg0: i32) -> (i32, i32) {
    %c0_i32 = arith.constant 0 : i32
    %c0_i32_0 = arith.constant 0 : i32
    return %c0_i32, %arg0 : i32, i32
  }
  func.func @transform_1(%arg0: i32) -> (i32, i32) {
    %c0_i32 = arith.constant 0 : i32
    %c0_i32_0 = arith.constant 0 : i32
    %c0_i32_1 = arith.constant 0 : i32
    return %c0_i32, %c0_i32_0 : i32, i32
  }
  func.func @transform_2(%arg0: i32) -> (i32, i32) {
    %c0_i32 = arith.constant 0 : i32
    %c0_i32_0 = arith.constant 0 : i32
    %c0_i32_1 = arith.constant 0 : i32
    return %c0_i32, %c0_i32_0 : i32, i32
  }
  func.func @transform_3(%arg0: i32) -> (i32, i32) {
    %c0_i32 = arith.constant 0 : i32
    %c0_i32_0 = arith.constant 0 : i32
    %c0_i32_1 = arith.constant 0 : i32
    return %c0_i32, %c0_i32_0 : i32, i32
  }
  func.func @transform_4(%arg0: i32) -> (i32, i32) {
    %c0_i32 = arith.constant 0 : i32
    %c0_i32_0 = arith.constant 0 : i32
    %c0_i32_1 = arith.constant 0 : i32
    return %c0_i32, %c0_i32_0 : i32, i32
  }
  func.func @transform_5(%arg0: i32) -> (i32, i32) {
    %c0_i32 = arith.constant 0 : i32
    %c0_i32_0 = arith.constant 0 : i32
    return %c0_i32, %arg0 : i32, i32
  }
}

</mosaic_0001>

<bundles_post_ra>
// kernel: tpu_custom_call.1
= control target key start
LH: loop header
LB: loop body
LE: loop exit
PB: predicated region body
PF: predicated region fallthrough
CT: control target
= control target key end

     0   :  { %vm61_vm0 = vcmask 1041408   ;;  %v297_v2 = vmov 0   ;;  %s376_s0 = inlined_call_operand.vmem [shape: f32[4,32], index: 0, kind: input, shape index: {}]   ;;  %s377_s1 = inlined_call_operand.vmem [shape: bf16[24,4], index: 1, kind: input, shape index: {}]   ;;  %s378_s2 = inlined_call_operand.vmem [shape: f32[24,1], index: 2, kind: input, shape index: {}]   ;;  %s379_s3 = inlined_call_operand.vmem [shape: bf16[4,8], index: 3, kind: input, shape index: {}]   ;;  %s380_s4 = inlined_call_operand.vmem [shape: f32[4,1], index: 4, kind: input, shape index: {}]   ;;  %s381_s5 = inlined_call_operand.hbm [shape: f32[4,32], index: 5, kind: output, shape index: {}]  }
   0x1   :  { %v334_v0 = vld [vmem:[%s376_s0] sm:$0xf]  ;;  %269 = vset.pattern.permute.xlu0 %v297_v2  ;;  %270 = vset.pattern.permute.xlu1 %v297_v2  ;;  %v29_v4 = vld [vmem:[%s378_s2 + $0x8] sm:$0xff] }
   0x2   :  { %v23_v1 = vpack.c.bf16 %v334_v0, %v334_v0  ;;  %v28_v3 = vld [vmem:[%s378_s2] sm:$0xff]  ;;  %38 = vperm.xlu1 %270, %v29_v4  }
   0x3   :  { %33 = vperm.xlu0 %269, %v28_v3  }
   0x4   :  { %10 = vsyncpa [#allocation3], 0  ;;  %v63_v5 = vsel %vm61_vm0, %v23_v1, 0  ;;  %v264_v6 = vld [vmem:[%s377_s1] sm:$0xff]  ;;  %vm54_vm1 = vcmask 31744   ;;  %v30_v7 = vld [vmem:[%s378_s2 + $0x10] sm:$0xff] }
   0x5   :  { %72 = vmatpush.bf16.msra.mxu0 %v63_v5  ;;  %v26_v8 = vld [vmem:[%s377_s1 + $0x8] sm:$0xf]  ;;  %vm86_vm2 = vcmask 130048   ;;  %s298_s2 = smov 112   ;;  %vm132_vm3 = vcmask 1043456   ;;  %vm108_vm4 = vcmask 64512  }
   0x6   :  { %v51_v9 = vunpack.c.l.b16 %v26_v8  ;;  %v226_v34 = vld [vmem:[%s380_s4] sm:$0xf]  ;;  %s300_s4 = smov [#allocation2]   ;;  %s243_s10 = sshll.u32 %s381_s5, 4  ;;  %vm234_vm5 = vcmask 257024   ;;  %s244_s10 = int_to_ptr.hbm [resolvable:$true] %s243_s10 }
   0x7   :  { %v27_v43 = vld [vmem:[%s379_s3] sm:$0x3]  ;;  %s299_s3 = smov 16   ;;  %s241_s7 = sshll.u32 %s300_s4, 4  ;;  %s242_s7 = int_to_ptr.vmem [resolvable:$true] %s241_s7 }
   0x8   :  { %256 = vmatmul.msk.bf16.vlgmr.msra.gmra.mxu0 %vm54_vm1, %v264_v6  ;;  %v53_v10 = vpack.c.b16 %v51_v9, %v51_v9 }
   0xb   :  { %43 = vperm.xlu0 %269, %v30_v7  }
  0x18   :  { %257 = vmatmul.msk.bf16.gmra.mxu0 %vm54_vm1, %v53_v10 }
  0x74   :  { %v39_v17 = vpop.permute.xlu1 %38 }
  0x75   :  { %v34_v11 = vpop.permute.xlu0 %33 }
  0x7d   :  { %v44_v23 = vpop.permute.xlu0 %43 }
  0x85   :  { %v74_v12 = vpop.f32.mrf.mxu0 }
  0x86   :  { %v75_v13 = vadd.f32 %v74_v12, %v34_v11 }
  0x88   :  { %v83_v14 = vpack.c.bf16 %v75_v13, %v75_v13 }
  0x8a   :  { %v155_v15 = vunpack.c.l.b16 %v83_v14  ;;  %v91_v16 = vsel %vm86_vm2, %v83_v14, 0 }
  0x8b   :  { %100 = vmatpush.bf16.xpose.msra.mxu1 %v91_v16 }
  0x8c   :  { %v156_v18 = vpack.c.b16 %v155_v15, %v155_v15 }
  0x8d   :  { %v76_v19 = vpop.f32.mrf.mxu0 }
  0x8e   :  { %v77_v20 = vadd.f32 %v76_v19, %v39_v17  ;;  %157 = vrot.lane.b32.xlu1 %v156_v18, %s298_s2 }
  0x90   :  { %v84_v21 = vpack.c.bf16 %v77_v20, %v77_v20 }
  0x92   :  { %v134_v22 = vsel %vm132_vm3, %v84_v21, 0  ;;  %v198_v30 = vunpack.c.l.b16 %v84_v21 }
  0x93   :  { %143 = vmatpush.bf16.msra.mxu3 %v134_v22 }
  0x94   :  { %v199_v31 = vpack.c.b16 %v198_v30, %v198_v30 }
  0x95   :  { %v79_v24 = vpop.f32.mrf.mxu0 }
  0x96   :  { %v80_v25 = vadd.f32 %v79_v24, %v44_v23  ;;  %229 = vperm.xlu1 %270, %v226_v34  }
  0x98   :  { %v85_v26 = vpack.c.bf16 %v80_v25, %v80_v25 }
  0x9a   :  { %258 = vmatmul.msk.bf16.vlgmr.msra.gmra.mxu1 %vm86_vm2, %v85_v26  ;;  %v150_v27 = vunpack.c.l.b16 %v85_v26 }
  0x9c   :  { %v151_v28 = vpack.c.b16 %v150_v27, %v150_v27 }
  0x9d   :  { %v81_v29 = vpop.f32.mrf.mxu0 }
  0x9e   :  { %152 = vrot.lane.b32.xlu2 %v151_v28, %s298_s2 }
  0xa6   :  { %200 = vrot.lane.b32.xlu2 %v199_v31, %s298_s2 }
  0xf8   :  { %v153_v35 = vpop.permute.xlu2 %152 }
 0x100   :  { %v158_v32 = vpop.permute.xlu1 %157  ;;  %v201_v38 = vpop.permute.xlu2 %200 }
 0x101   :  { %v163_v33 = vsel %vm86_vm2, %v158_v32, 0  ;;  %v206_v41 = vsel %vm132_vm3, %v201_v38, 0 }
 0x102   :  { %172 = vmatpush.bf16.xpose.msrb.mxu3 %v163_v33 }
 0x108   :  { %v230_v60 = vpop.permute.xlu1 %229 }
 0x117   :  { %v102_v36 = vpop.f32.mrf.mxu1 }
 0x118   :  { %v106_v37 = vmul.f32 0.0625, %v102_v36 }
 0x11a   :  { %v107_v39 = vpack.c.bf16 %v106_v37, %v106_v37 }
 0x11c   :  { %v113_v40 = vsel %vm108_vm4, %v107_v39, 0 }
 0x11d   :  { %122 = vmatpush.bf16.xpose.msra.mxu2 %v113_v40 }
 0x11f   :  { %v104_v42 = vpop.f32.mrf.mxu1 }
 0x124   :  { %259 = vmatmul.msk.bf16.vlgmr.msra.gmra.mxu2 %vm108_vm4, %v27_v43 }
 0x125   :  { %215 = vmatpush.bf16.msrb.mxu2 %v206_v41 }
 0x1a7   :  { %v124_v44 = vpop.f32.mrf.mxu2 }
 0x1a8   :  { %v128_v45 = vpack.c.bf16 %v124_v44, %v124_v44 }
 0x1aa   :  { %260 = vmatmul.msk.bf16.vlgmr.msra.gmra.mxu3 %vm108_vm4, %v128_v45 }
 0x1af   :  { %v126_v46 = vpop.f32.mrf.mxu2 }
 0x1ba   :  { %261 = vmatmul.msk.bf16.vlgmr.msrb.gmra.mxu3 %vm86_vm2, %v153_v35 }
 0x22d   :  { %v145_v47 = vpop.f32.mrf.mxu3 }
 0x235   :  { %v147_v48 = vpop.f32.mrf.mxu3 }
 0x23d   :  { %v174_v49 = vpop.f32.mrf.mxu3 }
 0x23e   :  { %v178_v50 = vmul.f32 0.0625, %v174_v49 }
 0x240   :  { %v179_v51 = vpack.c.bf16 %v178_v50, %v178_v50 }
 0x242   :  { %v181_v52 = vsel %vm108_vm4, %v179_v51, 0 }
 0x243   :  { %190 = vmatpush.bf16.xpose.msrb.mxu1 %v181_v52 }
 0x245   :  { %v176_v53 = vpop.f32.mrf.mxu3 }
 0x24a   :  { %262 = vmatmul.msk.bf16.vlgmr.msrb.gmra.mxu1 %vm108_vm4, %v27_v43 }
 0x2c7   :  { %v192_v54 = vpop.f32.mrf.mxu1 }
 0x2c8   :  { %v196_v55 = vpack.c.bf16 %v192_v54, %v192_v54 }
 0x2ca   :  { %263 = vmatmul.msk.bf16.vlgmr.msrb.gmra.mxu2 %vm108_vm4, %v196_v55 }
 0x2cf   :  { %v194_v56 = vpop.f32.mrf.mxu1 }
 0x34d   :  { %v217_v57 = vpop.f32.mrf.mxu2 }
 0x34e   :  { %222 = vrot.lane.b32.xlu0 %v217_v57, %s299_s3 }
 0x355   :  { %v219_v58 = vpop.f32.mrf.mxu2 }
 0x3c0   :  { %v223_v59 = vpop.permute.xlu0 %222 }
 0x3c1   :  { %v225_v61 = vsel %vm86_vm2, %v145_v47, %v223_v59 }
 0x3c2   :  { %v232_v62 = vadd.f32 %v230_v60, %v225_v61 }
 0x3c4   :  { %v233_v63 = vadd.f32 %v232_v62, %v334_v0 }
 0x3c6   :  { %235 = vst.msk [vmem:[#allocation2] sm:$0xf] %vm234_vm5, %v233_v63 }
 0x3c7   :  { %246 = dma.vmem_to_hbm [thread:$0]  %s242_s7, 64, %s244_s10, [#allocation3]  }
 0x3c8   :  { %295 = dma.done.wait [#allocation3], 64  }
 0x3c9   :  { %296 = vsyncadd [#allocation3], 4294967232 }
 0x3ca   :  { %251 = vsyncpa [#allocation3], 1 }

</bundles_post_ra>
